<compile_context>
chip_gen: v7x
topology: tpu7x:2x2x1
jax: 0.10.0
libtpu: 0.0.40
codegen_flags: <defaults>
</compile_context>

<pallas_src>
import functools

import jax
import jax.numpy as jnp
from jax.experimental import pallas as pl
from jax.experimental.pallas import tpu as pltpu


# ----------------------------------------------------------------------------
# Pallas kernel: whole forward pass (LSTM recurrence + 4 dense layers).
# All operands are tiny, so everything lives in VMEM as full-array blocks.
# ----------------------------------------------------------------------------
def _acoustic_kernel(x_ref, mask_ref, wl_ref, wd_ref, bd_ref, out_ref,
                     *, T, B, d_ain, H, D, n_class, whh_off):
    # --- load everything once -------------------------------------------------
    x = x_ref[...]                            # (T*B, d_ain)
    mask = mask_ref[...] > 0.0                # (T*B, 1)  bool validity mask
    wih = wl_ref[0:d_ain, :]                  # (d_ain, 4H)   gate order (i,f,o,g)
    b_lstm = wl_ref[d_ain:d_ain + 1, :]       # (1, 4H)
    whh = wl_ref[whh_off:whh_off + H, :]      # (H, 4H)

    # --- hoisted input projection: one MXU matmul for all timesteps ------------
    gates_x = jnp.dot(x, wih, preferred_element_type=jnp.float32) + b_lstm  # (T*B, 4H)

    h = jnp.zeros((B, H), jnp.float32)
    c = jnp.zeros((B, H), jnp.float32)

    # --- fully unrolled recurrence (T static & small); h/c stay in vregs -------
    for t in range(T):
        g_t = gates_x[t * B:(t + 1) * B, :] + jnp.dot(
            h, whh, preferred_element_type=jnp.float32)          # (B, 4H)
        sig = jax.nn.sigmoid(g_t[:, :3 * H])                      # i, f, o in one pass
        i_g = sig[:, 0:H]
        f_g = sig[:, H:2 * H]
        o_g = sig[:, 2 * H:3 * H]
        g_g = jnp.tanh(g_t[:, 3 * H:])
        c_new = f_g * c + i_g * g_g
        h_new = o_g * jnp.tanh(c_new)
        # pack_padded_sequence semantics: state frozen past each sequence end.
        m = mask[t * B:(t + 1) * B, :]                            # (B, 1) bool
        h = jnp.where(m, h_new, h)
        c = jnp.where(m, c_new, c)

    # --- RNNEncoder.linear_1 (dropout is identity in eval) ---------------------
    emb = jnp.dot(h, wd_ref[0:H, :], preferred_element_type=jnp.float32) + bd_ref[0:1, :]

    # --- SubNet -----------------------------------------------------------------
    y1 = jnp.tanh(jnp.dot(emb, wd_ref[H:H + D, :],
                          preferred_element_type=jnp.float32) + bd_ref[1:2, :])
    y2 = jnp.tanh(jnp.dot(y1, wd_ref[H + D:H + 2 * D, :],
                          preferred_element_type=jnp.float32) + bd_ref[2:3, :])
    pred = (jnp.dot(y2, wd_ref[H + 2 * D:H + 3 * D, :],
                    preferred_element_type=jnp.float32) + bd_ref[3:4, :])[:, :n_class]

    # --- single packed output: [emb | y2 | pred] --------------------------------
    out_ref[:, 0:D] = emb
    out_ref[:, D:2 * D] = y2
    out_ref[:, 2 * D:2 * D + n_class] = pred


def _reorder_gates(w):
    """Reorder PyTorch LSTM gate blocks (i, f, g, o) -> (i, f, o, g) on last axis."""
    i, f, g, o = jnp.split(w, 4, axis=-1)
    return jnp.concatenate([i, f, o, g], axis=-1)


# ----------------------------------------------------------------------------
# Wrapper: parameter packing + pallas_call
# ----------------------------------------------------------------------------
@jax.jit
def acoustic_forward(acoustic, a_len, params):
    T, B, d_ain = acoustic.shape
    H = params["w_hh"].shape[1]          # (4H, H)
    D = params["w_enc"].shape[0]         # d_aout
    n_class = params["w3"].shape[0]

    B_pad = max(8, ((B + 7) // 8) * 8)   # native f32 sublane tile

    # --- inputs: pad batch, flatten time, precompute validity mask --------------
    x_p = jnp.pad(acoustic.astype(jnp.float32), ((0, 0), (0, B_pad - B), (0, 0)))
    len_p = jnp.pad(a_len.astype(jnp.int32), (0, B_pad - B))
    x2d = x_p.reshape(T * B_pad, d_ain)
    mask = (jnp.arange(T, dtype=jnp.int32)[:, None] < len_p[None, :]).astype(jnp.float32)
    mask2d = mask.reshape(T * B_pad, 1)

    # --- LSTM weights: transpose to (in, out), reorder gates, fold biases, pack -
    wih_t = _reorder_gates(params["w_ih"].T)                              # (d_ain, 4H)
    whh_t = _reorder_gates(params["w_hh"].T)                              # (H, 4H)
    b_lstm = _reorder_gates((params["b_ih"] + params["b_hh"])[None, :])   # (1, 4H)
    whh_off = ((d_ain + 1 + 7) // 8) * 8                                  # sublane-align whh
    pad_rows = whh_off - (d_ain + 1)
    w_lstm = jnp.concatenate(
        [wih_t, b_lstm, jnp.zeros((pad_rows, 4 * H), jnp.float32), whh_t], axis=0)

    # --- dense weights / biases packed (w3 padded to D columns) -----------------
    w3_pad = jnp.pad(params["w3"].T, ((0, 0), (0, D - n_class)))          # (D, D)
    w_dense = jnp.concatenate(
        [params["w_enc"].T, params["w1"].T, params["w2"].T, w3_pad], axis=0)  # (H+3D, D)
    b3_pad = jnp.pad(params["b3"], (0, D - n_class))
    b_dense = jnp.stack([params["b_enc"], params["b1"], params["b2"], b3_pad], axis=0)

    # --- cost hint (tiny, latency-bound custom call) -----------------------------
    flops = (2 * T * B_pad * (d_ain + H) * 4 * H
             + 2 * B_pad * (H * D + 3 * D * D))
    transcendentals = T * B_pad * 5 * H + 2 * B_pad * D
    bytes_accessed = 4 * (T * B_pad * (d_ain + 1)
                          + w_lstm.shape[0] * 4 * H
                          + (H + 3 * D) * D + 4 * D
                          + B_pad * (2 * D + n_class))
    cost = pl.CostEstimate(flops=int(flops),
                           transcendentals=int(transcendentals),
                           bytes_accessed=int(bytes_accessed))

    vmem = pl.BlockSpec(memory_space=pltpu.MemorySpace.VMEM)
    packed = pl.pallas_call(
        functools.partial(_acoustic_kernel, T=T, B=B_pad, d_ain=d_ain, H=H, D=D,
                          n_class=n_class, whh_off=whh_off),
        out_shape=jax.ShapeDtypeStruct((B_pad, 2 * D + n_class), jnp.float32),
        in_specs=[vmem] * 5,
        out_specs=vmem,
        cost_estimate=cost,
    )(x2d, mask2d, w_lstm, w_dense, b_dense)

    emb = packed[:B, 0:D]
    out = packed[:B, D:2 * D]
    preds = packed[:B, 2 * D:2 * D + n_class]
    return emb, out, preds


# ----------------------------------------------------------------------------
# Pure-JAX reference (mirrors the PyTorch forward) for correctness check.
# ----------------------------------------------------------------------------
def acoustic_reference(acoustic, a_len, params):
    T, B, _ = acoustic.shape
    H = params["w_hh"].shape[1]
    h = jnp.zeros((B, H), jnp.float32)
    c = jnp.zeros((B, H), jnp.float32)
    for t in range(T):
        gates = (acoustic[t] @ params["w_ih"].T + params["b_ih"]
                 + h @ params["w_hh"].T + params["b_hh"])
        i = jax.nn.sigmoid(gates[:, :H])
        f = jax.nn.sigmoid(gates[:, H:2 * H])
        g = jnp.tanh(gates[:, 2 * H:3 * H])
        o = jax.nn.sigmoid(gates[:, 3 * H:4 * H])
        c_new = f * c + i * g
        h_new = o * jnp.tanh(c_new)
        valid = (t < a_len)[:, None]
        h = jnp.where(valid, h_new, h)
        c = jnp.where(valid, c_new, c)
    emb = h @ params["w_enc"].T + params["b_enc"]
    y1 = jnp.tanh(emb @ params["w1"].T + params["b1"])
    y2 = jnp.tanh(y1 @ params["w2"].T + params["b2"])
    y3 = y2 @ params["w3"].T + params["b3"]
    return emb, y2, y3


# ----------------------------------------------------------------------------
# Deterministic synthetic parameters (shapes from the module's __init__).
# ----------------------------------------------------------------------------
def init_params(key, d_ain, d_ah, d_aout, n_class):
    ks = jax.random.split(key, 12)
    s = 0.1

    def w(k, shape):
        return (s * jax.random.normal(k, shape)).astype(jnp.float32)

    return {
        # nn.LSTM(d_ain, d_ah, num_layers=1)
        "w_ih": w(ks[0], (4 * d_ah, d_ain)),
        "w_hh": w(ks[1], (4 * d_ah, d_ah)),
        "b_ih": w(ks[2], (4 * d_ah,)),
        "b_hh": w(ks[3], (4 * d_ah,)),
        # RNNEncoder.linear_1: Linear(d_ah, d_aout)
        "w_enc": w(ks[4], (d_aout, d_ah)),
        "b_enc": w(ks[5], (d_aout,)),
        # SubNet: Linear(d_aout, d_aout), Linear(d_aout, d_aout), Linear(d_aout, n_class)
        "w1": w(ks[6], (d_aout, d_aout)),
        "b1": w(ks[7], (d_aout,)),
        "w2": w(ks[8], (d_aout, d_aout)),
        "b2": w(ks[9], (d_aout,)),
        "w3": w(ks[10], (n_class, d_aout)),
        "b3": w(ks[11], (n_class,)),
    }


if __name__ == "__main__":
    # hp: d_ain=8, d_ah=16, d_aout=16, n_layer=1, bidirectional=False, n_class=1
    T, B = 8, 4
    d_ain, d_ah, d_aout, n_class = 8, 16, 16, 1

    key = jax.random.PRNGKey(0)
    k_x, k_p = jax.random.split(key)
    acoustic = jax.random.normal(k_x, (T, B, d_ain), dtype=jnp.float32)
    a_len = jnp.array([8, 5, 3, 7], dtype=jnp.int32)   # per-sequence valid lengths
    params = init_params(k_p, d_ain, d_ah, d_aout, n_class)

    emb, out, preds = acoustic_forward(acoustic, a_len, params)
    jax.block_until_ready((emb, out, preds))

    r_emb, r_out, r_preds = acoustic_reference(acoustic, a_len, params)
    assert emb.shape == (B, d_aout) and out.shape == (B, d_aout) and preds.shape == (B, n_class)
    assert jnp.allclose(emb, r_emb, atol=1e-5), "embedding mismatch"
    assert jnp.allclose(out, r_out, atol=1e-5), "acoustic_out mismatch"
    assert jnp.allclose(preds, r_preds, atol=1e-5), "preds mismatch"

    print("KERNEL_OK")
</pallas_src>

<mosaic_0001>
module attributes {stable_mosaic.version = 11 : i64} {
  func.func @_acoustic_kernel(%arg0: memref<64x8xf32, #tpu.memory_space<vmem>>, %arg1: memref<64x1xf32, #tpu.memory_space<vmem>>, %arg2: memref<32x64xf32, #tpu.memory_space<vmem>>, %arg3: memref<64x16xf32, #tpu.memory_space<vmem>>, %arg4: memref<4x16xf32, #tpu.memory_space<vmem>>, %arg5: memref<8x33xf32, #tpu.memory_space<vmem>>) attributes {dimension_semantics = [], scalar_prefetch = 0 : i64, scratch_operands = 0 : i64, tpu.core_type = #tpu.core_type<tc>} {
    %c0 = arith.constant 0 : index
    %c0_0 = arith.constant 0 : index
    %0 = vector.load %arg0[%c0, %c0_0] : memref<64x8xf32, #tpu.memory_space<vmem>>, vector<64x8xf32>
    %c0_1 = arith.constant 0 : index
    %c0_2 = arith.constant 0 : index
    %1 = vector.load %arg1[%c0_1, %c0_2] : memref<64x1xf32, #tpu.memory_space<vmem>>, vector<64x1xf32>
    %cst = arith.constant 0.000000e+00 : f32
    %2 = vector.broadcast %cst : f32 to vector<64x1xf32>
    %3 = arith.cmpf ogt, %1, %2 : vector<64x1xf32>
    %c0_3 = arith.constant 0 : index
    %c0_4 = arith.constant 0 : index
    %4 = vector.load %arg2[%c0_3, %c0_4] : memref<32x64xf32, #tpu.memory_space<vmem>>, vector<8x64xf32>
    %c8 = arith.constant 8 : index
    %c0_5 = arith.constant 0 : index
    %5 = vector.load %arg2[%c8, %c0_5] : memref<32x64xf32, #tpu.memory_space<vmem>>, vector<1x64xf32>
    %c16 = arith.constant 16 : index
    %c0_6 = arith.constant 0 : index
    %6 = vector.load %arg2[%c16, %c0_6] : memref<32x64xf32, #tpu.memory_space<vmem>>, vector<16x64xf32>
    %cst_7 = arith.constant dense<0.000000e+00> : vector<64x64xf32>
    %7 = tpu.matmul %0, %4, %cst_7 {dimension_numbers = #tpu.dot_dimension_numbers<[1], [0], [0], [1], [0, 0, 1, 1], [], []>} : vector<64x8xf32>, vector<8x64xf32>, vector<64x64xf32> -> vector<64x64xf32>
    %8 = vector.broadcast %5 : vector<1x64xf32> to vector<64x64xf32>
    %9 = arith.addf %7, %8 : vector<64x64xf32>
    %cst_8 = arith.constant 0.000000e+00 : f32
    %10 = vector.broadcast %cst_8 : f32 to vector<8x16xf32>
    %cst_9 = arith.constant 0.000000e+00 : f32
    %11 = vector.broadcast %cst_9 : f32 to vector<8x16xf32>
    %12 = vector.extract_strided_slice %9 {offsets = [0, 0], sizes = [8, 64], strides = [1, 1]} : vector<64x64xf32> to vector<8x64xf32>
    %cst_10 = arith.constant dense<0.000000e+00> : vector<8x64xf32>
    %13 = tpu.matmul %10, %6, %cst_10 {dimension_numbers = #tpu.dot_dimension_numbers<[1], [0], [0], [1], [0, 0, 1, 1], [], []>} : vector<8x16xf32>, vector<16x64xf32>, vector<8x64xf32> -> vector<8x64xf32>
    %14 = arith.addf %12, %13 : vector<8x64xf32>
    %15 = vector.extract_strided_slice %14 {offsets = [0, 0], sizes = [8, 48], strides = [1, 1]} : vector<8x64xf32> to vector<8x48xf32>
    %16 = arith.negf %15 : vector<8x48xf32>
    %17 = math.exp %16 : vector<8x48xf32>
    %cst_11 = arith.constant 1.000000e+00 : f32
    %18 = vector.broadcast %cst_11 : f32 to vector<8x48xf32>
    %19 = arith.addf %18, %17 : vector<8x48xf32>
    %20 = arith.divf %18, %19 : vector<8x48xf32>
    %21 = vector.extract_strided_slice %20 {offsets = [0, 0], sizes = [8, 16], strides = [1, 1]} : vector<8x48xf32> to vector<8x16xf32>
    %22 = vector.extract_strided_slice %20 {offsets = [0, 16], sizes = [8, 16], strides = [1, 1]} : vector<8x48xf32> to vector<8x16xf32>
    %23 = vector.extract_strided_slice %20 {offsets = [0, 32], sizes = [8, 16], strides = [1, 1]} : vector<8x48xf32> to vector<8x16xf32>
    %24 = vector.extract_strided_slice %14 {offsets = [0, 48], sizes = [8, 16], strides = [1, 1]} : vector<8x64xf32> to vector<8x16xf32>
    %25 = math.tanh %24 : vector<8x16xf32>
    %26 = arith.mulf %22, %11 : vector<8x16xf32>
    %27 = arith.mulf %21, %25 : vector<8x16xf32>
    %28 = arith.addf %26, %27 : vector<8x16xf32>
    %29 = math.tanh %28 : vector<8x16xf32>
    %30 = arith.mulf %23, %29 : vector<8x16xf32>
    %31 = vector.extract_strided_slice %3 {offsets = [0, 0], sizes = [8, 1], strides = [1, 1]} : vector<64x1xi1> to vector<8x1xi1>
    %32 = vector.shape_cast %31 : vector<8x1xi1> to vector<8x1xi1>
    %33 = vector.broadcast %32 : vector<8x1xi1> to vector<8x16xi1>
    %34 = arith.select %33, %30, %10 : vector<8x16xi1>, vector<8x16xf32>
    %35 = vector.shape_cast %31 : vector<8x1xi1> to vector<8x1xi1>
    %36 = vector.broadcast %35 : vector<8x1xi1> to vector<8x16xi1>
    %37 = arith.select %36, %28, %11 : vector<8x16xi1>, vector<8x16xf32>
    %38 = vector.extract_strided_slice %9 {offsets = [8, 0], sizes = [8, 64], strides = [1, 1]} : vector<64x64xf32> to vector<8x64xf32>
    %cst_12 = arith.constant dense<0.000000e+00> : vector<8x64xf32>
    %39 = tpu.matmul %34, %6, %cst_12 {dimension_numbers = #tpu.dot_dimension_numbers<[1], [0], [0], [1], [0, 0, 1, 1], [], []>} : vector<8x16xf32>, vector<16x64xf32>, vector<8x64xf32> -> vector<8x64xf32>
    %40 = arith.addf %38, %39 : vector<8x64xf32>
    %41 = vector.extract_strided_slice %40 {offsets = [0, 0], sizes = [8, 48], strides = [1, 1]} : vector<8x64xf32> to vector<8x48xf32>
    %42 = arith.negf %41 : vector<8x48xf32>
    %43 = math.exp %42 : vector<8x48xf32>
    %cst_13 = arith.constant 1.000000e+00 : f32
    %44 = vector.broadcast %cst_13 : f32 to vector<8x48xf32>
    %45 = arith.addf %44, %43 : vector<8x48xf32>
    %46 = arith.divf %44, %45 : vector<8x48xf32>
    %47 = vector.extract_strided_slice %46 {offsets = [0, 0], sizes = [8, 16], strides = [1, 1]} : vector<8x48xf32> to vector<8x16xf32>
    %48 = vector.extract_strided_slice %46 {offsets = [0, 16], sizes = [8, 16], strides = [1, 1]} : vector<8x48xf32> to vector<8x16xf32>
    %49 = vector.extract_strided_slice %46 {offsets = [0, 32], sizes = [8, 16], strides = [1, 1]} : vector<8x48xf32> to vector<8x16xf32>
    %50 = vector.extract_strided_slice %40 {offsets = [0, 48], sizes = [8, 16], strides = [1, 1]} : vector<8x64xf32> to vector<8x16xf32>
    %51 = math.tanh %50 : vector<8x16xf32>
    %52 = arith.mulf %48, %37 : vector<8x16xf32>
    %53 = arith.mulf %47, %51 : vector<8x16xf32>
    %54 = arith.addf %52, %53 : vector<8x16xf32>
    %55 = math.tanh %54 : vector<8x16xf32>
    %56 = arith.mulf %49, %55 : vector<8x16xf32>
    %57 = vector.extract_strided_slice %3 {offsets = [8, 0], sizes = [8, 1], strides = [1, 1]} : vector<64x1xi1> to vector<8x1xi1>
    %58 = vector.shape_cast %57 : vector<8x1xi1> to vector<8x1xi1>
    %59 = vector.broadcast %58 : vector<8x1xi1> to vector<8x16xi1>
    %60 = arith.select %59, %56, %34 : vector<8x16xi1>, vector<8x16xf32>
    %61 = vector.shape_cast %57 : vector<8x1xi1> to vector<8x1xi1>
    %62 = vector.broadcast %61 : vector<8x1xi1> to vector<8x16xi1>
    %63 = arith.select %62, %54, %37 : vector<8x16xi1>, vector<8x16xf32>
    %64 = vector.extract_strided_slice %9 {offsets = [16, 0], sizes = [8, 64], strides = [1, 1]} : vector<64x64xf32> to vector<8x64xf32>
    %cst_14 = arith.constant dense<0.000000e+00> : vector<8x64xf32>
    %65 = tpu.matmul %60, %6, %cst_14 {dimension_numbers = #tpu.dot_dimension_numbers<[1], [0], [0], [1], [0, 0, 1, 1], [], []>} : vector<8x16xf32>, vector<16x64xf32>, vector<8x64xf32> -> vector<8x64xf32>
    %66 = arith.addf %64, %65 : vector<8x64xf32>
    %67 = vector.extract_strided_slice %66 {offsets = [0, 0], sizes = [8, 48], strides = [1, 1]} : vector<8x64xf32> to vector<8x48xf32>
    %68 = arith.negf %67 : vector<8x48xf32>
    %69 = math.exp %68 : vector<8x48xf32>
    %cst_15 = arith.constant 1.000000e+00 : f32
    %70 = vector.broadcast %cst_15 : f32 to vector<8x48xf32>
    %71 = arith.addf %70, %69 : vector<8x48xf32>
    %72 = arith.divf %70, %71 : vector<8x48xf32>
    %73 = vector.extract_strided_slice %72 {offsets = [0, 0], sizes = [8, 16], strides = [1, 1]} : vector<8x48xf32> to vector<8x16xf32>
    %74 = vector.extract_strided_slice %72 {offsets = [0, 16], sizes = [8, 16], strides = [1, 1]} : vector<8x48xf32> to vector<8x16xf32>
    %75 = vector.extract_strided_slice %72 {offsets = [0, 32], sizes = [8, 16], strides = [1, 1]} : vector<8x48xf32> to vector<8x16xf32>
    %76 = vector.extract_strided_slice %66 {offsets = [0, 48], sizes = [8, 16], strides = [1, 1]} : vector<8x64xf32> to vector<8x16xf32>
    %77 = math.tanh %76 : vector<8x16xf32>
    %78 = arith.mulf %74, %63 : vector<8x16xf32>
    %79 = arith.mulf %73, %77 : vector<8x16xf32>
    %80 = arith.addf %78, %79 : vector<8x16xf32>
    %81 = math.tanh %80 : vector<8x16xf32>
    %82 = arith.mulf %75, %81 : vector<8x16xf32>
    %83 = vector.extract_strided_slice %3 {offsets = [16, 0], sizes = [8, 1], strides = [1, 1]} : vector<64x1xi1> to vector<8x1xi1>
    %84 = vector.shape_cast %83 : vector<8x1xi1> to vector<8x1xi1>
    %85 = vector.broadcast %84 : vector<8x1xi1> to vector<8x16xi1>
    %86 = arith.select %85, %82, %60 : vector<8x16xi1>, vector<8x16xf32>
    %87 = vector.shape_cast %83 : vector<8x1xi1> to vector<8x1xi1>
    %88 = vector.broadcast %87 : vector<8x1xi1> to vector<8x16xi1>
    %89 = arith.select %88, %80, %63 : vector<8x16xi1>, vector<8x16xf32>
    %90 = vector.extract_strided_slice %9 {offsets = [24, 0], sizes = [8, 64], strides = [1, 1]} : vector<64x64xf32> to vector<8x64xf32>
    %cst_16 = arith.constant dense<0.000000e+00> : vector<8x64xf32>
    %91 = tpu.matmul %86, %6, %cst_16 {dimension_numbers = #tpu.dot_dimension_numbers<[1], [0], [0], [1], [0, 0, 1, 1], [], []>} : vector<8x16xf32>, vector<16x64xf32>, vector<8x64xf32> -> vector<8x64xf32>
    %92 = arith.addf %90, %91 : vector<8x64xf32>
    %93 = vector.extract_strided_slice %92 {offsets = [0, 0], sizes = [8, 48], strides = [1, 1]} : vector<8x64xf32> to vector<8x48xf32>
    %94 = arith.negf %93 : vector<8x48xf32>
    %95 = math.exp %94 : vector<8x48xf32>
    %cst_17 = arith.constant 1.000000e+00 : f32
    %96 = vector.broadcast %cst_17 : f32 to vector<8x48xf32>
    %97 = arith.addf %96, %95 : vector<8x48xf32>
    %98 = arith.divf %96, %97 : vector<8x48xf32>
    %99 = vector.extract_strided_slice %98 {offsets = [0, 0], sizes = [8, 16], strides = [1, 1]} : vector<8x48xf32> to vector<8x16xf32>
    %100 = vector.extract_strided_slice %98 {offsets = [0, 16], sizes = [8, 16], strides = [1, 1]} : vector<8x48xf32> to vector<8x16xf32>
    %101 = vector.extract_strided_slice %98 {offsets = [0, 32], sizes = [8, 16], strides = [1, 1]} : vector<8x48xf32> to vector<8x16xf32>
    %102 = vector.extract_strided_slice %92 {offsets = [0, 48], sizes = [8, 16], strides = [1, 1]} : vector<8x64xf32> to vector<8x16xf32>
    %103 = math.tanh %102 : vector<8x16xf32>
    %104 = arith.mulf %100, %89 : vector<8x16xf32>
    %105 = arith.mulf %99, %103 : vector<8x16xf32>
    %106 = arith.addf %104, %105 : vector<8x16xf32>
    %107 = math.tanh %106 : vector<8x16xf32>
    %108 = arith.mulf %101, %107 : vector<8x16xf32>
    %109 = vector.extract_strided_slice %3 {offsets = [24, 0], sizes = [8, 1], strides = [1, 1]} : vector<64x1xi1> to vector<8x1xi1>
    %110 = vector.shape_cast %109 : vector<8x1xi1> to vector<8x1xi1>
    %111 = vector.broadcast %110 : vector<8x1xi1> to vector<8x16xi1>
    %112 = arith.select %111, %108, %86 : vector<8x16xi1>, vector<8x16xf32>
    %113 = vector.shape_cast %109 : vector<8x1xi1> to vector<8x1xi1>
    %114 = vector.broadcast %113 : vector<8x1xi1> to vector<8x16xi1>
    %115 = arith.select %114, %106, %89 : vector<8x16xi1>, vector<8x16xf32>
    %116 = vector.extract_strided_slice %9 {offsets = [32, 0], sizes = [8, 64], strides = [1, 1]} : vector<64x64xf32> to vector<8x64xf32>
    %cst_18 = arith.constant dense<0.000000e+00> : vector<8x64xf32>
    %117 = tpu.matmul %112, %6, %cst_18 {dimension_numbers = #tpu.dot_dimension_numbers<[1], [0], [0], [1], [0, 0, 1, 1], [], []>} : vector<8x16xf32>, vector<16x64xf32>, vector<8x64xf32> -> vector<8x64xf32>
    %118 = arith.addf %116, %117 : vector<8x64xf32>
    %119 = vector.extract_strided_slice %118 {offsets = [0, 0], sizes = [8, 48], strides = [1, 1]} : vector<8x64xf32> to vector<8x48xf32>
    %120 = arith.negf %119 : vector<8x48xf32>
    %121 = math.exp %120 : vector<8x48xf32>
    %cst_19 = arith.constant 1.000000e+00 : f32
    %122 = vector.broadcast %cst_19 : f32 to vector<8x48xf32>
    %123 = arith.addf %122, %121 : vector<8x48xf32>
    %124 = arith.divf %122, %123 : vector<8x48xf32>
    %125 = vector.extract_strided_slice %124 {offsets = [0, 0], sizes = [8, 16], strides = [1, 1]} : vector<8x48xf32> to vector<8x16xf32>
    %126 = vector.extract_strided_slice %124 {offsets = [0, 16], sizes = [8, 16], strides = [1, 1]} : vector<8x48xf32> to vector<8x16xf32>
    %127 = vector.extract_strided_slice %124 {offsets = [0, 32], sizes = [8, 16], strides = [1, 1]} : vector<8x48xf32> to vector<8x16xf32>
    %128 = vector.extract_strided_slice %118 {offsets = [0, 48], sizes = [8, 16], strides = [1, 1]} : vector<8x64xf32> to vector<8x16xf32>
    %129 = math.tanh %128 : vector<8x16xf32>
    %130 = arith.mulf %126, %115 : vector<8x16xf32>
    %131 = arith.mulf %125, %129 : vector<8x16xf32>
    %132 = arith.addf %130, %131 : vector<8x16xf32>
    %133 = math.tanh %132 : vector<8x16xf32>
    %134 = arith.mulf %127, %133 : vector<8x16xf32>
    %135 = vector.extract_strided_slice %3 {offsets = [32, 0], sizes = [8, 1], strides = [1, 1]} : vector<64x1xi1> to vector<8x1xi1>
    %136 = vector.shape_cast %135 : vector<8x1xi1> to vector<8x1xi1>
    %137 = vector.broadcast %136 : vector<8x1xi1> to vector<8x16xi1>
    %138 = arith.select %137, %134, %112 : vector<8x16xi1>, vector<8x16xf32>
    %139 = vector.shape_cast %135 : vector<8x1xi1> to vector<8x1xi1>
    %140 = vector.broadcast %139 : vector<8x1xi1> to vector<8x16xi1>
    %141 = arith.select %140, %132, %115 : vector<8x16xi1>, vector<8x16xf32>
    %142 = vector.extract_strided_slice %9 {offsets = [40, 0], sizes = [8, 64], strides = [1, 1]} : vector<64x64xf32> to vector<8x64xf32>
    %cst_20 = arith.constant dense<0.000000e+00> : vector<8x64xf32>
    %143 = tpu.matmul %138, %6, %cst_20 {dimension_numbers = #tpu.dot_dimension_numbers<[1], [0], [0], [1], [0, 0, 1, 1], [], []>} : vector<8x16xf32>, vector<16x64xf32>, vector<8x64xf32> -> vector<8x64xf32>
    %144 = arith.addf %142, %143 : vector<8x64xf32>
    %145 = vector.extract_strided_slice %144 {offsets = [0, 0], sizes = [8, 48], strides = [1, 1]} : vector<8x64xf32> to vector<8x48xf32>
    %146 = arith.negf %145 : vector<8x48xf32>
    %147 = math.exp %146 : vector<8x48xf32>
    %cst_21 = arith.constant 1.000000e+00 : f32
    %148 = vector.broadcast %cst_21 : f32 to vector<8x48xf32>
    %149 = arith.addf %148, %147 : vector<8x48xf32>
    %150 = arith.divf %148, %149 : vector<8x48xf32>
    %151 = vector.extract_strided_slice %150 {offsets = [0, 0], sizes = [8, 16], strides = [1, 1]} : vector<8x48xf32> to vector<8x16xf32>
    %152 = vector.extract_strided_slice %150 {offsets = [0, 16], sizes = [8, 16], strides = [1, 1]} : vector<8x48xf32> to vector<8x16xf32>
    %153 = vector.extract_strided_slice %150 {offsets = [0, 32], sizes = [8, 16], strides = [1, 1]} : vector<8x48xf32> to vector<8x16xf32>
    %154 = vector.extract_strided_slice %144 {offsets = [0, 48], sizes = [8, 16], strides = [1, 1]} : vector<8x64xf32> to vector<8x16xf32>
    %155 = math.tanh %154 : vector<8x16xf32>
    %156 = arith.mulf %152, %141 : vector<8x16xf32>
    %157 = arith.mulf %151, %155 : vector<8x16xf32>
    %158 = arith.addf %156, %157 : vector<8x16xf32>
    %159 = math.tanh %158 : vector<8x16xf32>
    %160 = arith.mulf %153, %159 : vector<8x16xf32>
    %161 = vector.extract_strided_slice %3 {offsets = [40, 0], sizes = [8, 1], strides = [1, 1]} : vector<64x1xi1> to vector<8x1xi1>
    %162 = vector.shape_cast %161 : vector<8x1xi1> to vector<8x1xi1>
    %163 = vector.broadcast %162 : vector<8x1xi1> to vector<8x16xi1>
    %164 = arith.select %163, %160, %138 : vector<8x16xi1>, vector<8x16xf32>
    %165 = vector.shape_cast %161 : vector<8x1xi1> to vector<8x1xi1>
    %166 = vector.broadcast %165 : vector<8x1xi1> to vector<8x16xi1>
    %167 = arith.select %166, %158, %141 : vector<8x16xi1>, vector<8x16xf32>
    %168 = vector.extract_strided_slice %9 {offsets = [48, 0], sizes = [8, 64], strides = [1, 1]} : vector<64x64xf32> to vector<8x64xf32>
    %cst_22 = arith.constant dense<0.000000e+00> : vector<8x64xf32>
    %169 = tpu.matmul %164, %6, %cst_22 {dimension_numbers = #tpu.dot_dimension_numbers<[1], [0], [0], [1], [0, 0, 1, 1], [], []>} : vector<8x16xf32>, vector<16x64xf32>, vector<8x64xf32> -> vector<8x64xf32>
    %170 = arith.addf %168, %169 : vector<8x64xf32>
    %171 = vector.extract_strided_slice %170 {offsets = [0, 0], sizes = [8, 48], strides = [1, 1]} : vector<8x64xf32> to vector<8x48xf32>
    %172 = arith.negf %171 : vector<8x48xf32>
    %173 = math.exp %172 : vector<8x48xf32>
    %cst_23 = arith.constant 1.000000e+00 : f32
    %174 = vector.broadcast %cst_23 : f32 to vector<8x48xf32>
    %175 = arith.addf %174, %173 : vector<8x48xf32>
    %176 = arith.divf %174, %175 : vector<8x48xf32>
    %177 = vector.extract_strided_slice %176 {offsets = [0, 0], sizes = [8, 16], strides = [1, 1]} : vector<8x48xf32> to vector<8x16xf32>
    %178 = vector.extract_strided_slice %176 {offsets = [0, 16], sizes = [8, 16], strides = [1, 1]} : vector<8x48xf32> to vector<8x16xf32>
    %179 = vector.extract_strided_slice %176 {offsets = [0, 32], sizes = [8, 16], strides = [1, 1]} : vector<8x48xf32> to vector<8x16xf32>
    %180 = vector.extract_strided_slice %170 {offsets = [0, 48], sizes = [8, 16], strides = [1, 1]} : vector<8x64xf32> to vector<8x16xf32>
    %181 = math.tanh %180 : vector<8x16xf32>
    %182 = arith.mulf %178, %167 : vector<8x16xf32>
    %183 = arith.mulf %177, %181 : vector<8x16xf32>
    %184 = arith.addf %182, %183 : vector<8x16xf32>
    %185 = math.tanh %184 : vector<8x16xf32>
    %186 = arith.mulf %179, %185 : vector<8x16xf32>
    %187 = vector.extract_strided_slice %3 {offsets = [48, 0], sizes = [8, 1], strides = [1, 1]} : vector<64x1xi1> to vector<8x1xi1>
    %188 = vector.shape_cast %187 : vector<8x1xi1> to vector<8x1xi1>
    %189 = vector.broadcast %188 : vector<8x1xi1> to vector<8x16xi1>
    %190 = arith.select %189, %186, %164 : vector<8x16xi1>, vector<8x16xf32>
    %191 = vector.shape_cast %187 : vector<8x1xi1> to vector<8x1xi1>
    %192 = vector.broadcast %191 : vector<8x1xi1> to vector<8x16xi1>
    %193 = arith.select %192, %184, %167 : vector<8x16xi1>, vector<8x16xf32>
    %194 = vector.extract_strided_slice %9 {offsets = [56, 0], sizes = [8, 64], strides = [1, 1]} : vector<64x64xf32> to vector<8x64xf32>
    %cst_24 = arith.constant dense<0.000000e+00> : vector<8x64xf32>
    %195 = tpu.matmul %190, %6, %cst_24 {dimension_numbers = #tpu.dot_dimension_numbers<[1], [0], [0], [1], [0, 0, 1, 1], [], []>} : vector<8x16xf32>, vector<16x64xf32>, vector<8x64xf32> -> vector<8x64xf32>
    %196 = arith.addf %194, %195 : vector<8x64xf32>
    %197 = vector.extract_strided_slice %196 {offsets = [0, 0], sizes = [8, 48], strides = [1, 1]} : vector<8x64xf32> to vector<8x48xf32>
    %198 = arith.negf %197 : vector<8x48xf32>
    %199 = math.exp %198 : vector<8x48xf32>
    %cst_25 = arith.constant 1.000000e+00 : f32
    %200 = vector.broadcast %cst_25 : f32 to vector<8x48xf32>
    %201 = arith.addf %200, %199 : vector<8x48xf32>
    %202 = arith.divf %200, %201 : vector<8x48xf32>
    %203 = vector.extract_strided_slice %202 {offsets = [0, 0], sizes = [8, 16], strides = [1, 1]} : vector<8x48xf32> to vector<8x16xf32>
    %204 = vector.extract_strided_slice %202 {offsets = [0, 16], sizes = [8, 16], strides = [1, 1]} : vector<8x48xf32> to vector<8x16xf32>
    %205 = vector.extract_strided_slice %202 {offsets = [0, 32], sizes = [8, 16], strides = [1, 1]} : vector<8x48xf32> to vector<8x16xf32>
    %206 = vector.extract_strided_slice %196 {offsets = [0, 48], sizes = [8, 16], strides = [1, 1]} : vector<8x64xf32> to vector<8x16xf32>
    %207 = math.tanh %206 : vector<8x16xf32>
    %208 = arith.mulf %204, %193 : vector<8x16xf32>
    %209 = arith.mulf %203, %207 : vector<8x16xf32>
    %210 = arith.addf %208, %209 : vector<8x16xf32>
    %211 = math.tanh %210 : vector<8x16xf32>
    %212 = arith.mulf %205, %211 : vector<8x16xf32>
    %213 = vector.extract_strided_slice %3 {offsets = [56, 0], sizes = [8, 1], strides = [1, 1]} : vector<64x1xi1> to vector<8x1xi1>
    %214 = vector.shape_cast %213 : vector<8x1xi1> to vector<8x1xi1>
    %215 = vector.broadcast %214 : vector<8x1xi1> to vector<8x16xi1>
    %216 = arith.select %215, %212, %190 : vector<8x16xi1>, vector<8x16xf32>
    %c0_26 = arith.constant 0 : index
    %c0_27 = arith.constant 0 : index
    %217 = vector.load %arg3[%c0_26, %c0_27] : memref<64x16xf32, #tpu.memory_space<vmem>>, vector<16x16xf32>
    %cst_28 = arith.constant dense<0.000000e+00> : vector<8x16xf32>
    %218 = tpu.matmul %216, %217, %cst_28 {dimension_numbers = #tpu.dot_dimension_numbers<[1], [0], [0], [1], [0, 0, 1, 1], [], []>} : vector<8x16xf32>, vector<16x16xf32>, vector<8x16xf32> -> vector<8x16xf32>
    %c0_29 = arith.constant 0 : index
    %c0_30 = arith.constant 0 : index
    %219 = vector.load %arg4[%c0_29, %c0_30] : memref<4x16xf32, #tpu.memory_space<vmem>>, vector<1x16xf32>
    %220 = vector.broadcast %219 : vector<1x16xf32> to vector<8x16xf32>
    %221 = arith.addf %218, %220 : vector<8x16xf32>
    %c16_31 = arith.constant 16 : index
    %c0_32 = arith.constant 0 : index
    %222 = vector.load %arg3[%c16_31, %c0_32] : memref<64x16xf32, #tpu.memory_space<vmem>>, vector<16x16xf32>
    %cst_33 = arith.constant dense<0.000000e+00> : vector<8x16xf32>
    %223 = tpu.matmul %221, %222, %cst_33 {dimension_numbers = #tpu.dot_dimension_numbers<[1], [0], [0], [1], [0, 0, 1, 1], [], []>} : vector<8x16xf32>, vector<16x16xf32>, vector<8x16xf32> -> vector<8x16xf32>
    %c1 = arith.constant 1 : index
    %c0_34 = arith.constant 0 : index
    %224 = vector.load %arg4[%c1, %c0_34] : memref<4x16xf32, #tpu.memory_space<vmem>>, vector<1x16xf32>
    %225 = vector.broadcast %224 : vector<1x16xf32> to vector<8x16xf32>
    %226 = arith.addf %223, %225 : vector<8x16xf32>
    %227 = math.tanh %226 : vector<8x16xf32>
    %c32 = arith.constant 32 : index
    %c0_35 = arith.constant 0 : index
    %228 = vector.load %arg3[%c32, %c0_35] : memref<64x16xf32, #tpu.memory_space<vmem>>, vector<16x16xf32>
    %cst_36 = arith.constant dense<0.000000e+00> : vector<8x16xf32>
    %229 = tpu.matmul %227, %228, %cst_36 {dimension_numbers = #tpu.dot_dimension_numbers<[1], [0], [0], [1], [0, 0, 1, 1], [], []>} : vector<8x16xf32>, vector<16x16xf32>, vector<8x16xf32> -> vector<8x16xf32>
    %c2 = arith.constant 2 : index
    %c0_37 = arith.constant 0 : index
    %230 = vector.load %arg4[%c2, %c0_37] : memref<4x16xf32, #tpu.memory_space<vmem>>, vector<1x16xf32>
    %231 = vector.broadcast %230 : vector<1x16xf32> to vector<8x16xf32>
    %232 = arith.addf %229, %231 : vector<8x16xf32>
    %233 = math.tanh %232 : vector<8x16xf32>
    %c48 = arith.constant 48 : index
    %c0_38 = arith.constant 0 : index
    %234 = vector.load %arg3[%c48, %c0_38] : memref<64x16xf32, #tpu.memory_space<vmem>>, vector<16x16xf32>
    %cst_39 = arith.constant dense<0.000000e+00> : vector<8x16xf32>
    %235 = tpu.matmul %233, %234, %cst_39 {dimension_numbers = #tpu.dot_dimension_numbers<[1], [0], [0], [1], [0, 0, 1, 1], [], []>} : vector<8x16xf32>, vector<16x16xf32>, vector<8x16xf32> -> vector<8x16xf32>
    %c3 = arith.constant 3 : index
    %c0_40 = arith.constant 0 : index
    %236 = vector.load %arg4[%c3, %c0_40] : memref<4x16xf32, #tpu.memory_space<vmem>>, vector<1x16xf32>
    %237 = vector.broadcast %236 : vector<1x16xf32> to vector<8x16xf32>
    %238 = arith.addf %235, %237 : vector<8x16xf32>
    %239 = vector.extract_strided_slice %238 {offsets = [0, 0], sizes = [8, 1], strides = [1, 1]} : vector<8x16xf32> to vector<8x1xf32>
    %c0_41 = arith.constant 0 : index
    %c0_42 = arith.constant 0 : index
    %240 = vector.load %arg5[%c0_41, %c0_42] : memref<8x33xf32, #tpu.memory_space<vmem>>, vector<8x16xf32>
    tpu.vector_store %arg5[%c0_41, %c0_42], %221 {strides = array<i32>} : memref<8x33xf32, #tpu.memory_space<vmem>>, vector<8x16xf32>,
    %c0_43 = arith.constant 0 : index
    %c16_44 = arith.constant 16 : index
    %241 = vector.load %arg5[%c0_43, %c16_44] : memref<8x33xf32, #tpu.memory_space<vmem>>, vector<8x16xf32>
    tpu.vector_store %arg5[%c0_43, %c16_44], %233 {strides = array<i32>} : memref<8x33xf32, #tpu.memory_space<vmem>>, vector<8x16xf32>,
    %c0_45 = arith.constant 0 : index
    %c32_46 = arith.constant 32 : index
    %242 = vector.load %arg5[%c0_45, %c32_46] : memref<8x33xf32, #tpu.memory_space<vmem>>, vector<8x1xf32>
    tpu.vector_store %arg5[%c0_45, %c32_46], %239 {strides = array<i32>} : memref<8x33xf32, #tpu.memory_space<vmem>>, vector<8x1xf32>,
    return
  }
}

</mosaic_0001>

<bundles_post_ra>
// kernel: acoustic_forward.1
= control target key start
LH: loop header
LB: loop body
LE: loop exit
PB: predicated region body
PF: predicated region fallthrough
CT: control target
= control target key end

     0   :  { %vm52_vm0 = vcmask 64512   ;;  %v1665_v3 = vmov 0.0|0.0   ;;  %vm1666_vm1 = vmmov 0   ;;  %v1667_v4 = vmov 0.0   ;;  %s1669_s7 = smov 80   ;;  %s1671_s8 = smov 96   ;;  %s1948_s2 = inlined_call_operand.vmem [shape: f32[32,64], index: 2, kind: input, shape index: {}]   ;;  %s1949_s0 = inlined_call_operand.vmem [shape: f32[64,8], index: 0, kind: input, shape index: {}]   ;;  %s1950_s1 = inlined_call_operand.vmem [shape: f32[64,1], index: 1, kind: input, shape index: {}]   ;;  %s1951_s3 = inlined_call_operand.vmem [shape: f32[64,16], index: 3, kind: input, shape index: {}]   ;;  %s1952_s4 = inlined_call_operand.vmem [shape: f32[4,16], index: 4, kind: input, shape index: {}]   ;;  %s1953_s5 = inlined_call_operand.vmem [shape: f32[8,33], index: 5, kind: output, shape index: {}]  }
   0x1   :  { %v44_v0 = vld [vmem:[%s1948_s2] sm:$0xff]  ;;  %v46_v1 = vld [vmem:[%s1948_s2 + $0x10] sm:$0xff]  ;;  %v47_v2 = vld [vmem:[%s1948_s2 + $0x18] sm:$0xff]  ;;  %1551 = vmatprep.subr.bf16.mxu1 %v1665_v3  ;;  %1471 = vmatprep.mubr.msk.f32.mxu1 %vm1666_vm1, %v1667_v4  ;;  %v1668_v8 = vmov 0   ;;  %vm182_vm4 = vcmask 130048  }
   0x2   :  { %1453 = vmatprep.subr.mxu0 %v44_v0  ;;  %v1715_v5 = vpack.c.bf16 %v47_v2, %v46_v1  ;;  %v20_v6 = vld [vmem:[%s1949_s0] sm:$0xff]  ;;  %v21_v7 = vld [vmem:[%s1949_s0 + $0x8] sm:$0xff]  ;;  %1595 = vset.pattern.permute.xlu1 %v1668_v8  ;;  %v22_v51 = vld [vmem:[%s1949_s0 + $0x10] sm:$0xff] }
   0x3   :  { %1454 = vmatpush3.msra.mxu0 %v44_v0  ;;  %1455 = vmatprep.mubr.msk.f32.mxu0 %vm52_vm0, %v20_v6  ;;  %v28_v9 = vld [vmem:[%s1950_s1] sm:$0xff]  ;;  %v1744_v11 = vld [vmem:[%s1948_s2 + $0x8] ss:$0 sm:$0xff]  ;;  %s1670_s2 = smov 16   ;;  %v23_v52 = vld [vmem:[%s1949_s0 + $0x18] sm:$0xff] }
   0x4   :  { %1456 = vmatmul.mubr.msk.f32.vlgmr.msra.gmra.mrb[0].mxu0 %vm52_vm0, %v21_v7  ;;  %1553 = vmatpush3.bf16.msra.mxu1 %v1715_v5  ;;  %vm36_vm2 = vcmp.gt.f32.partialorder %v28_v9, 0.0  ;;  %v29_v38 = vld [vmem:[%s1950_s1 + $0x8] sm:$0xff]  ;;  %v30_v1 = vld [vmem:[%s1950_s1 + $0x10] sm:$0xff] }
   0x5   :  { %1554 = vmatprep.subr.bf16.mxu1 %v1665_v3  ;;  %1563 = vmatprep.subr.bf16.mxu0 %v1665_v3  ;;  %v281_v10 = vsel %vm36_vm2, 1, %v1668_v8  ;;  %vm37_vm5 = vcmp.gt.f32.partialorder %v29_v38, 0.0  ;;  %vm38_vm7 = vcmp.gt.f32.partialorder %v30_v1, 0.0 }
   0x6   :  { %1565 = vmatpush3.bf16.msra.mxu0 %v1715_v5  ;;  %1596 = vset.pattern.permute.xlu0 %v1668_v8  ;;  %v388_v40 = vsel %vm37_vm5, 1, %v1668_v8  ;;  %v495_v6 = vsel %vm38_vm7, 1, %v1668_v8  ;;  %vm1370_vm5 = vcmask 269568  }
   0x7   :  { %1472 = vmatmul.mubr.f32.vlgmr.msra.gmra.mrb[0].mxu1 %v1667_v4  ;;  %1569 = vmatprep.subr.bf16.mxu0 %v1665_v3 }
   0x8   :  { %1556 = vmatpush3.bf16.msra.mxu1 %v1715_v5  ;;  %1478 = vmatprep.mubr.msk.f32.mxu1 %vm1666_vm1, %v1667_v4 }
   0x9   :  { %1557 = vmatprep.subr.bf16.mxu1 %v1665_v3  ;;  %283 = vperm.xlu1 %1595, %v281_v10  }
   0xa   :  { %1458 = vmatprep.mubr.msk.f32.mxu0 %vm52_vm0, %v22_v51 }
   0xb   :  { %1459 = vmatmul.mubr.msk.f32.gmra.mrb[2].mxu0 %vm52_vm0, %v23_v52 }
  0x88   :  { %v284_v29 = vpop.permute.xlu1 %283 }
  0x89   :  { %vm285_vm3 = vcmp.eq.s32.totalorder %v284_v29, 1  ;;  %v31_v29 = vld [vmem:[%s1950_s1 + $0x18] sm:$0xff] }
  0x8a   :  { %vm39_vm9 = vcmp.gt.f32.partialorder %v31_v29, 0.0 }
  0xd7   :  { %v1457_v12 = vpop.f32.mrb[0].mxu0 }
  0xd8   :  { %v143_v13 = vpop.f32.mrb[1].mxu0  ;;  %v149_v34 = vadd.f32 %v1457_v12, %v1744_v11 }
  0xd9   :  { %v144_v14 = vadd.f32 %v1744_v11, %v143_v13 }
  0xda   :  { %v252_v15 = vpop.f32.mrb[0].mxu1 }
  0xdb   :  { %v256_v16 = vadd.f32 %v252_v15, %v144_v14  ;;  %v1473_v17 = vpop.f32.mrb[1].mxu1 }
  0xdd   :  { %1597 = vtanh.f32 %v256_v16  ;;  %v1385_v19 = vmul.f32 -1.442695, %v256_v16 }
  0xde   :  { %v1460_v58 = vpop.f32.mrb[2].mxu0 }
  0xdf   :  { %1599 = vpow2.f32 %v1385_v19  ;;  %v153_v59 = vpop.f32.mrb[3].mxu0 }
  0xe0   :  { %v154_v61 = vadd.f32 %v1744_v11, %v153_v59 }
  0xe7   :  { %v1598_v18 = vpop.eup %1597 }
  0xe8   :  { %266 = vrot.lane.b32.xlu0 %v1598_v18, %s1669_s7 }
  0xe9   :  { %v1600_v20 = vpop.eup %1599 }
  0xea   :  { %v260_v21 = vadd.f32 1.0, %v1600_v20 }
  0xec   :  { %1601 = vrcp.f32 %v260_v21 }
  0xf6   :  { %v1602_v22 = vpop.eup %1601 }
  0xf7   :  { %v264_v25 = vmul.f32 0.0, %v1602_v22 }
 0x15a   :  { %v267_v23 = vpop.permute.xlu0 %266 }
 0x15b   :  { %v269_v24 = vmul.f32 %v1602_v22, %v267_v23 }
 0x15d   :  { %271 = vrot.lane.b32.xlu0 %v269_v24, %s1670_s2 }
 0x1cf   :  { %v272_v26 = vpop.permute.xlu0 %271 }
 0x1d0   :  { %v274_v27 = vadd.f32 %v272_v26, %v264_v25  ;;  %v159_v25 = vadd.f32 %v1460_v58, %v1744_v11 }
 0x1d2   :  { %1603 = vtanh.f32 %v274_v27  ;;  %v287_v47 = vsel %vm285_vm3, %v274_v27, 0.0 }
 0x1dc   :  { %v1604_v28 = vpop.eup %1603 }
 0x1dd   :  { %277 = vrot.lane.b32.xlu1 %v1604_v28, %s1670_s2 }
 0x24f   :  { %v278_v30 = vpop.permute.xlu1 %277 }
 0x250   :  { %v280_v31 = vmul.f32 %v1602_v22, %v278_v30 }
 0x252   :  { %v286_v32 = vsel %vm285_vm3, %v280_v31, 0.0  ;;  %v602_v31 = vsel %vm39_vm9, 1, %v1668_v8 }
 0x253   :  { %289 = vrot.lane.b32.xlu0 %v286_v32, %s1671_s8 }
 0x2c5   :  { %v290_v33 = vpop.permute.xlu0 %289 }
 0x2c6   :  { %1479 = vmatmul.mubr.msk.f32.vlgmr.msra.gmra.mrb[2].mxu1 %vm182_vm4, %v290_v33 }
 0x2c7   :  { %1559 = vmatpush3.bf16.msra.mxu1 %v1715_v5  ;;  %1485 = vmatprep.mubr.msk.f32.mxu1 %vm1666_vm1, %v1667_v4 }
 0x2c8   :  { %1560 = vmatprep.subr.bf16.mxu1 %v1665_v3 }
 0x399   :  { %v359_v35 = vpop.f32.mrb[2].mxu1 }
 0x39a   :  { %v363_v36 = vadd.f32 %v359_v35, %v149_v34  ;;  %v1480_v37 = vpop.f32.mrb[3].mxu1 }
 0x39c   :  { %1605 = vtanh.f32 %v363_v36  ;;  %v1387_v41 = vmul.f32 -1.442695, %v363_v36 }
 0x39e   :  { %1607 = vpow2.f32 %v1387_v41 }
 0x3a6   :  { %v1606_v39 = vpop.eup %1605 }
 0x3a7   :  { %373 = vrot.lane.b32.xlu1 %v1606_v39, %s1669_s7 }
 0x3a8   :  { %v1608_v42 = vpop.eup %1607 }
 0x3a9   :  { %v367_v43 = vadd.f32 1.0, %v1608_v42  ;;  %v24_v42 = vld [vmem:[%s1949_s0 + $0x20] sm:$0xff] }
 0x3aa   :  { %1461 = vmatprep.mubr.msk.f32.mxu0 %vm52_vm0, %v24_v42 }
 0x3ab   :  { %390 = vperm.xlu1 %1595, %v388_v40   ;;  %1609 = vrcp.f32 %v367_v43  ;;  %v25_v43 = vld [vmem:[%s1949_s0 + $0x28] sm:$0xff] }
 0x3ac   :  { %1462 = vmatmul.mubr.msk.f32.gmra.mrb[4].mxu0 %vm52_vm0, %v25_v43 }
 0x3b5   :  { %v1610_v44 = vpop.eup %1609 }
 0x3b6   :  { %v371_v48 = vmul.f32 %v1610_v44, %v287_v47 }
 0x419   :  { %v374_v45 = vpop.permute.xlu1 %373 }
 0x41a   :  { %v376_v46 = vmul.f32 %v1610_v44, %v374_v45  ;;  %v27_v45 = vld [vmem:[%s1949_s0 + $0x38] sm:$0xff] }
 0x41c   :  { %378 = vrot.lane.b32.xlu0 %v376_v46, %s1670_s2 }
 0x42a   :  { %v391_v54 = vpop.permute.xlu1 %390 }
 0x42b   :  { %vm392_vm6 = vcmp.eq.s32.totalorder %v391_v54, 1 }
 0x47f   :  { %v1463_v51 = vpop.f32.mrb[4].mxu0 }
 0x480   :  { %v163_v52 = vpop.f32.mrb[5].mxu0 }
 0x48e   :  { %v379_v49 = vpop.permute.xlu0 %378 }
 0x48f   :  { %v381_v50 = vadd.f32 %v379_v49, %v371_v48 }
 0x491   :  { %1611 = vtanh.f32 %v381_v50  ;;  %v394_v15 = vsel %vm392_vm6, %v381_v50, %v287_v47 }
 0x49b   :  { %v1612_v53 = vpop.eup %1611 }
 0x49c   :  { %384 = vrot.lane.b32.xlu0 %v1612_v53, %s1670_s2 }
 0x50e   :  { %v385_v55 = vpop.permute.xlu0 %384 }
 0x50f   :  { %v387_v56 = vmul.f32 %v1610_v44, %v385_v55  ;;  %v26_v44 = vld [vmem:[%s1949_s0 + $0x30] sm:$0xff] }
 0x510   :  { %1464 = vmatprep.mubr.msk.f32.mxu0 %vm52_vm0, %v26_v44 }
 0x511   :  { %v393_v57 = vsel %vm392_vm6, %v387_v56, %v286_v32  ;;  %1465 = vmatmul.mubr.msk.f32.gmra.mrb[6].mxu0 %vm52_vm0, %v27_v45  ;;  %v164_v56 = vadd.f32 %v1744_v11, %v163_v52 }
 0x512   :  { %396 = vrot.lane.b32.xlu1 %v393_v57, %s1671_s8  ;;  %1499 = vmatprep.mubr.msk.f32.mxu0 %vm1666_vm1, %v1667_v4 }
 0x584   :  { %v397_v60 = vpop.permute.xlu1 %396 }
 0x585   :  { %1486 = vmatmul.mubr.msk.f32.vlgmr.msra.gmra.mrb[4].mxu1 %vm182_vm4, %v397_v60  ;;  %v32_v60 = vld [vmem:[%s1950_s1 + $0x20] sm:$0xff] }
 0x586   :  { %1562 = vmatpush3.bf16.msra.mxu1 %v1715_v5  ;;  %1492 = vmatprep.mubr.msk.f32.mxu1 %vm1666_vm1, %v1667_v4  ;;  %vm40_vm11 = vcmp.gt.f32.partialorder %v32_v60, 0.0 }
 0x587   :  { %1566 = vmatprep.subr.bf16.mxu1 %v1665_v3 }
 0x5e4   :  { %v1826_v53 = vpop.f32.mrb[6].mxu0 }
 0x5e5   :  { %v1828_v54 = vpop.f32.mrb[7].mxu0 }
 0x5e6   :  { %v174_v42 = vadd.f32 %v1744_v11, %v1828_v54 }
 0x658   :  { %v466_v62 = vpop.f32.mrb[4].mxu1 }
 0x659   :  { %v470_v63 = vadd.f32 %v466_v62, %v154_v61  ;;  %v1487_v0 = vpop.f32.mrb[5].mxu1  ;;  %v709_v62 = vsel %vm40_vm11, 1, %v1668_v8 }
 0x65b   :  { %1613 = vtanh.f32 %v470_v63  ;;  %v1389_v7 = vmul.f32 -1.442695, %v470_v63 }
 0x65d   :  { %1615 = vpow2.f32 %v1389_v7 }
 0x665   :  { %v1614_v2 = vpop.eup %1613 }
 0x666   :  { %480 = vrot.lane.b32.xlu0 %v1614_v2, %s1669_s7 }
 0x667   :  { %v1616_v9 = vpop.eup %1615 }
 0x668   :  { %v474_v10 = vadd.f32 1.0, %v1616_v9 }
 0x66a   :  { %497 = vperm.xlu0 %1596, %v495_v6   ;;  %1617 = vrcp.f32 %v474_v10 }
 0x674   :  { %v1618_v12 = vpop.eup %1617 }
 0x675   :  { %v478_v16 = vmul.f32 %v1618_v12, %v394_v15 }
 0x6d8   :  { %v481_v13 = vpop.permute.xlu0 %480 }
 0x6d9   :  { %v483_v14 = vmul.f32 %v1618_v12, %v481_v13 }
 0x6db   :  { %485 = vrot.lane.b32.xlu1 %v483_v14, %s1670_s2 }
 0x6e9   :  { %v498_v20 = vpop.permute.xlu0 %497 }
 0x6ea   :  { %vm499_vm8 = vcmp.eq.s32.totalorder %v498_v20, 1  ;;  %v169_v20 = vadd.f32 %v1463_v51, %v1744_v11 }
 0x74d   :  { %v486_v17 = vpop.permute.xlu1 %485 }
 0x74e   :  { %v488_v18 = vadd.f32 %v486_v17, %v478_v16 }
 0x750   :  { %1619 = vtanh.f32 %v488_v18  ;;  %v501_v38 = vsel %vm499_vm8, %v488_v18, %v394_v15 }
 0x75a   :  { %v1620_v19 = vpop.eup %1619 }
 0x75b   :  { %491 = vrot.lane.b32.xlu1 %v1620_v19, %s1670_s2 }
 0x7cd   :  { %v492_v21 = vpop.permute.xlu1 %491 }
 0x7ce   :  { %v494_v22 = vmul.f32 %v1618_v12, %v492_v21 }
 0x7d0   :  { %v500_v23 = vsel %vm499_vm8, %v494_v22, %v393_v57 }
 0x7d1   :  { %503 = vrot.lane.b32.xlu1 %v500_v23, %s1671_s8 }
 0x843   :  { %v504_v24 = vpop.permute.xlu1 %503 }
 0x844   :  { %1493 = vmatmul.mubr.msk.f32.vlgmr.msra.gmra.mrb[6].mxu1 %vm182_vm4, %v504_v24  ;;  %v33_v24 = vld [vmem:[%s1950_s1 + $0x28] sm:$0xff] }
 0x845   :  { %1568 = vmatpush3.bf16.msra.mxu1 %v1715_v5  ;;  %1506 = vmatprep.mubr.msk.f32.mxu1 %vm1666_vm1, %v1667_v4  ;;  %vm41_vm13 = vcmp.gt.f32.partialorder %v33_v24, 0.0 }
 0x846   :  { %1572 = vmatprep.subr.bf16.mxu1 %v1665_v3 }
 0x917   :  { %v573_v26 = vpop.f32.mrb[6].mxu1 }
 0x918   :  { %v577_v27 = vadd.f32 %v573_v26, %v159_v25  ;;  %v1494_v28 = vpop.f32.mrb[7].mxu1 }
 0x91a   :  { %1621 = vtanh.f32 %v577_v27  ;;  %v1391_v32 = vmul.f32 -1.442695, %v577_v27 }
 0x91c   :  { %1623 = vpow2.f32 %v1391_v32 }
 0x924   :  { %v1622_v30 = vpop.eup %1621 }
 0x925   :  { %587 = vrot.lane.b32.xlu0 %v1622_v30, %s1669_s7 }
 0x926   :  { %v1624_v33 = vpop.eup %1623 }
 0x927   :  { %v581_v34 = vadd.f32 1.0, %v1624_v33 }
 0x929   :  { %604 = vperm.xlu0 %1596, %v602_v31   ;;  %1625 = vrcp.f32 %v581_v34 }
 0x933   :  { %v1626_v35 = vpop.eup %1625 }
 0x934   :  { %v585_v39 = vmul.f32 %v1626_v35, %v501_v38 }
 0x997   :  { %v588_v36 = vpop.permute.xlu0 %587 }
 0x998   :  { %v590_v37 = vmul.f32 %v1626_v35, %v588_v36 }
 0x99a   :  { %592 = vrot.lane.b32.xlu1 %v590_v37, %s1670_s2 }
 0x9a8   :  { %v605_v47 = vpop.permute.xlu0 %604 }
 0x9a9   :  { %vm606_vm10 = vcmp.eq.s32.totalorder %v605_v47, 1 }
 0xa0c   :  { %v593_v40 = vpop.permute.xlu1 %592 }
 0xa0d   :  { %v595_v41 = vadd.f32 %v593_v40, %v585_v39 }
 0xa0f   :  { %1627 = vtanh.f32 %v595_v41  ;;  %v608_v9 = vsel %vm606_vm10, %v595_v41, %v501_v38 }
 0xa19   :  { %v1628_v46 = vpop.eup %1627 }
 0xa1a   :  { %598 = vrot.lane.b32.xlu1 %v1628_v46, %s1670_s2  ;;  %v34_v46 = vld [vmem:[%s1950_s1 + $0x30] sm:$0xff] }
 0xa1b   :  { %vm42_vm15 = vcmp.gt.f32.partialorder %v34_v46, 0.0 }
 0xa8c   :  { %v599_v48 = vpop.permute.xlu1 %598 }
 0xa8d   :  { %v601_v49 = vmul.f32 %v1626_v35, %v599_v48  ;;  %v923_v48 = vsel %vm42_vm15, 1, %v1668_v8 }
 0xa8f   :  { %v607_v50 = vsel %vm606_vm10, %v601_v49, %v500_v23 }
 0xa90   :  { %610 = vrot.lane.b32.xlu0 %v607_v50, %s1671_s8 }
 0xb02   :  { %v611_v55 = vpop.permute.xlu0 %610 }
 0xb03   :  { %1500 = vmatmul.mubr.msk.f32.vlgmr.msra.gmra.mrb[8].mxu0 %vm182_vm4, %v611_v55 }
 0xb04   :  { %1571 = vmatpush3.bf16.msra.mxu0 %v1715_v5  ;;  %1513 = vmatprep.mubr.msk.f32.mxu0 %vm1666_vm1, %v1667_v4 }
 0xb05   :  { %1575 = vmatprep.subr.bf16.mxu0 %v1665_v3 }
 0xbd6   :  { %v680_v57 = vpop.f32.mrb[8].mxu0 }
 0xbd7   :  { %v684_v58 = vadd.f32 %v680_v57, %v164_v56  ;;  %v1501_v59 = vpop.f32.mrb[9].mxu0 }
 0xbd9   :  { %1629 = vtanh.f32 %v684_v58  ;;  %v1393_v63 = vmul.f32 -1.442695, %v684_v58 }
 0xbdb   :  { %1631 = vpow2.f32 %v1393_v63 }
 0xbe3   :  { %v1630_v61 = vpop.eup %1629 }
 0xbe4   :  { %694 = vrot.lane.b32.xlu1 %v1630_v61, %s1669_s7 }
 0xbe5   :  { %v1632_v0 = vpop.eup %1631 }
 0xbe6   :  { %v688_v1 = vadd.f32 1.0, %v1632_v0 }
 0xbe8   :  { %711 = vperm.xlu1 %1595, %v709_v62   ;;  %1633 = vrcp.f32 %v688_v1 }
 0xbf2   :  { %v1634_v2 = vpop.eup %1633 }
 0xbf3   :  { %v692_v10 = vmul.f32 %v1634_v2, %v608_v9 }
 0xc56   :  { %v695_v6 = vpop.permute.xlu1 %694 }
 0xc57   :  { %v697_v7 = vmul.f32 %v1634_v2, %v695_v6 }
 0xc59   :  { %699 = vrot.lane.b32.xlu0 %v697_v7, %s1670_s2 }
 0xc67   :  { %v712_v15 = vpop.permute.xlu1 %711 }
 0xc68   :  { %vm713_vm12 = vcmp.eq.s32.totalorder %v712_v15, 1 }
 0xccb   :  { %v700_v12 = vpop.permute.xlu0 %699 }
 0xccc   :  { %v702_v13 = vadd.f32 %v700_v12, %v692_v10  ;;  %v35_v10 = vld [vmem:[%s1950_s1 + $0x38] sm:$0xff]  ;;  %s1672_s1 = smov 32  }
 0xccd   :  { %vm43_vm2 = vcmp.gt.f32.partialorder %v35_v10, 0.0 }
 0xcce   :  { %1635 = vtanh.f32 %v702_v13  ;;  %v715_v32 = vsel %vm713_vm12, %v702_v13, %v608_v9  ;;  %v1030_v13 = vsel %vm43_vm2, 1, %v1668_v8 }
 0xcd8   :  { %v1636_v14 = vpop.eup %1635 }
 0xcd9   :  { %705 = vrot.lane.b32.xlu0 %v1636_v14, %s1670_s2 }
 0xd4b   :  { %v706_v16 = vpop.permute.xlu0 %705 }
 0xd4c   :  { %v708_v17 = vmul.f32 %v1634_v2, %v706_v16  ;;  %v179_v2 = vadd.f32 %v1826_v53, %v1744_v11 }
 0xd4e   :  { %v714_v18 = vsel %vm713_vm12, %v708_v17, %v607_v50 }
 0xd4f   :  { %717 = vrot.lane.b32.xlu1 %v714_v18, %s1671_s8 }
 0xdc1   :  { %v718_v19 = vpop.permute.xlu1 %717 }
 0xdc2   :  { %1507 = vmatmul.mubr.msk.f32.vlgmr.msra.gmra.mrb[8].mxu1 %vm182_vm4, %v718_v19 }
 0xdc3   :  { %1574 = vmatpush3.bf16.msra.mxu1 %v1715_v5  ;;  %1520 = vmatprep.mubr.msk.f32.mxu1 %vm1666_vm1, %v1667_v4  ;;  %v816_v5 = vsel %vm41_vm13, 1, %v1668_v8  ;;  %v1036_v8 = vld [vmem:[%s1951_s3] sm:$0xff] }
 0xdc4   :  { %1578 = vmatprep.subr.bf16.mxu1 %v1665_v3 }
 0xe95   :  { %v787_v21 = vpop.f32.mrb[8].mxu1 }
 0xe96   :  { %v791_v22 = vadd.f32 %v787_v21, %v169_v20  ;;  %v1508_v23 = vpop.f32.mrb[9].mxu1 }
 0xe98   :  { %1637 = vtanh.f32 %v791_v22  ;;  %v1395_v26 = vmul.f32 -1.442695, %v791_v22  ;;  %v1037_v22 = vld [vmem:[%s1951_s3 + $0x8] sm:$0xff] }
 0xe99   :  { %v1576_v23 = vpack.c.bf16 %v1037_v22, %v1036_v8 }
 0xe9a   :  { %1639 = vpow2.f32 %v1395_v26 }
 0xea2   :  { %v1638_v25 = vpop.eup %1637 }
 0xea3   :  { %801 = vrot.lane.b32.xlu0 %v1638_v25, %s1669_s7  ;;  %v1118_v25 = vld [vmem:[%s1951_s3 + $0x10] sm:$0xff] }
 0xea4   :  { %v1640_v27 = vpop.eup %1639 }
 0xea5   :  { %v795_v28 = vadd.f32 1.0, %v1640_v27 }
 0xea7   :  { %818 = vperm.xlu0 %1596, %v816_v5   ;;  %1641 = vrcp.f32 %v795_v28  ;;  %v1119_v5 = vld [vmem:[%s1951_s3 + $0x18] sm:$0xff] }
 0xea8   :  { %v1579_v26 = vpack.c.bf16 %v1119_v5, %v1118_v25 }
 0xeb1   :  { %v1642_v29 = vpop.eup %1641 }
 0xeb2   :  { %v799_v33 = vmul.f32 %v1642_v29, %v715_v32 }
 0xf15   :  { %v802_v30 = vpop.permute.xlu0 %801 }
 0xf16   :  { %v804_v31 = vmul.f32 %v1642_v29, %v802_v30 }
 0xf18   :  { %806 = vrot.lane.b32.xlu1 %v804_v31, %s1670_s2 }
 0xf26   :  { %v819_v37 = vpop.permute.xlu0 %818 }
 0xf27   :  { %vm820_vm14 = vcmp.eq.s32.totalorder %v819_v37, 1 }
 0xf8a   :  { %v807_v34 = vpop.permute.xlu1 %806 }
 0xf8b   :  { %v809_v35 = vadd.f32 %v807_v34, %v799_v33 }
 0xf8d   :  { %1643 = vtanh.f32 %v809_v35  ;;  %v822_v56 = vsel %vm820_vm14, %v809_v35, %v715_v32  ;;  %v1400_v32 = vld [vmem:[%s1952_s4] ss:$0 sm:$0xff] }
 0xf8e   :  { %v1199_v35 = vld [vmem:[%s1951_s3 + $0x20] sm:$0xff] }
 0xf97   :  { %v1644_v36 = vpop.eup %1643 }
 0xf98   :  { %812 = vrot.lane.b32.xlu1 %v1644_v36, %s1670_s2  ;;  %v1200_v36 = vld [vmem:[%s1951_s3 + $0x28] sm:$0xff] }
 0xf99   :  { %v1582_v37 = vpack.c.bf16 %v1200_v36, %v1199_v35 }
0x100a   :  { %v813_v38 = vpop.permute.xlu1 %812 }
0x100b   :  { %v815_v39 = vmul.f32 %v1642_v29, %v813_v38  ;;  %v1402_v38 = vld [vmem:[%s1952_s4 + $0x1] ss:$0 sm:$0xff] }
0x100d   :  { %v821_v40 = vsel %vm820_vm14, %v815_v39, %v714_v18 }
0x100e   :  { %824 = vrot.lane.b32.xlu0 %v821_v40, %s1671_s8 }
0x1080   :  { %v825_v41 = vpop.permute.xlu0 %824 }
0x1081   :  { %1514 = vmatmul.mubr.msk.f32.vlgmr.msra.gmra.mrb[10].mxu0 %vm182_vm4, %v825_v41 }
0x1082   :  { %1527 = vmatprep.mubr.msk.f32.mxu0 %vm1666_vm1, %v1667_v4  ;;  %1577 = vmatpush3.bf16.msra.mxu0 %v1576_v23 }
0x1083   :  { %1581 = vmatprep.subr.bf16.mxu0 %v1665_v3 }
0x1154   :  { %v894_v43 = vpop.f32.mrb[10].mxu0 }
0x1155   :  { %v898_v44 = vadd.f32 %v894_v43, %v174_v42  ;;  %v1515_v45 = vpop.f32.mrb[11].mxu0  ;;  %v1281_v43 = vld [vmem:[%s1951_s3 + $0x38] sm:$0xff] }
0x1156   :  { %v1404_v45 = vld [vmem:[%s1952_s4 + $0x2] ss:$0 sm:$0xff] }
0x1157   :  { %1645 = vtanh.f32 %v898_v44  ;;  %v1397_v49 = vmul.f32 -1.442695, %v898_v44 }
0x1159   :  { %1647 = vpow2.f32 %v1397_v49 }
0x1161   :  { %v1646_v47 = vpop.eup %1645 }
0x1162   :  { %908 = vrot.lane.b32.xlu1 %v1646_v47, %s1669_s7 }
0x1163   :  { %v1648_v50 = vpop.eup %1647 }
0x1164   :  { %v902_v51 = vadd.f32 1.0, %v1648_v50 }
0x1166   :  { %925 = vperm.xlu1 %1595, %v923_v48   ;;  %1649 = vrcp.f32 %v902_v51  ;;  %v1406_v51 = vld [vmem:[%s1952_s4 + $0x3] ss:$0 sm:$0xff] }
0x1170   :  { %v1650_v52 = vpop.eup %1649 }
0x1171   :  { %v906_v57 = vmul.f32 %v1650_v52, %v822_v56 }
0x11d4   :  { %v909_v54 = vpop.permute.xlu1 %908 }
0x11d5   :  { %v911_v55 = vmul.f32 %v1650_v52, %v909_v54 }
0x11d7   :  { %913 = vrot.lane.b32.xlu0 %v911_v55, %s1670_s2 }
0x11e5   :  { %v926_v61 = vpop.permute.xlu1 %925 }
0x11e6   :  { %vm927_vm0 = vcmp.eq.s32.totalorder %v926_v61, 1 }
0x1249   :  { %v914_v58 = vpop.permute.xlu0 %913 }
0x124a   :  { %v916_v59 = vadd.f32 %v914_v58, %v906_v57 }
0x124c   :  { %1651 = vtanh.f32 %v916_v59  ;;  %v929_v18 = vsel %vm927_vm0, %v916_v59, %v822_v56 }
0x1256   :  { %v1652_v60 = vpop.eup %1651 }
0x1257   :  { %919 = vrot.lane.b32.xlu0 %v1652_v60, %s1670_s2 }
0x12c9   :  { %v920_v62 = vpop.permute.xlu0 %919 }
0x12ca   :  { %v922_v63 = vmul.f32 %v1650_v52, %v920_v62 }
0x12cc   :  { %v928_v0 = vsel %vm927_vm0, %v922_v63, %v821_v40 }
0x12cd   :  { %931 = vrot.lane.b32.xlu1 %v928_v0, %s1671_s8 }
0x133f   :  { %v932_v1 = vpop.permute.xlu1 %931 }
0x1340   :  { %1521 = vmatmul.mubr.msk.f32.vlgmr.msra.gmra.mrb[10].mxu1 %vm182_vm4, %v932_v1 }
0x1341   :  { %1534 = vmatprep.mubr.msk.f32.mxu1 %vm1666_vm1, %v1667_v4  ;;  %1580 = vmatpush3.bf16.msra.mxu1 %v1579_v26 }
0x1342   :  { %1584 = vmatprep.subr.bf16.mxu1 %v1665_v3 }
0x1413   :  { %v1001_v6 = vpop.f32.mrb[10].mxu1 }
0x1414   :  { %v1005_v7 = vadd.f32 %v1001_v6, %v179_v2  ;;  %v1522_v9 = vpop.f32.mrb[11].mxu1 }
0x1416   :  { %1653 = vtanh.f32 %v1005_v7  ;;  %v1399_v14 = vmul.f32 -1.442695, %v1005_v7 }
0x1418   :  { %1655 = vpow2.f32 %v1399_v14 }
0x1420   :  { %v1654_v12 = vpop.eup %1653 }
0x1421   :  { %1015 = vrot.lane.b32.xlu0 %v1654_v12, %s1669_s7 }
0x1422   :  { %v1656_v15 = vpop.eup %1655 }
0x1423   :  { %v1009_v16 = vadd.f32 1.0, %v1656_v15 }
0x1425   :  { %1032 = vperm.xlu0 %1596, %v1030_v13   ;;  %1657 = vrcp.f32 %v1009_v16 }
0x142f   :  { %v1658_v11 = vpop.eup %1657 }
0x1430   :  { %v1013_v19 = vmul.f32 %v1658_v11, %v929_v18 }
0x1493   :  { %v1016_v53 = vpop.permute.xlu0 %1015 }
0x1494   :  { %v1018_v17 = vmul.f32 %v1658_v11, %v1016_v53 }
0x1496   :  { %1020 = vrot.lane.b32.xlu1 %v1018_v17, %s1670_s2 }
0x14a4   :  { %v1033_v27 = vpop.permute.xlu0 %1032 }
0x14a5   :  { %vm1034_vm3 = vcmp.eq.s32.totalorder %v1033_v27, 1 }
0x1508   :  { %v1021_v20 = vpop.permute.xlu1 %1020 }
0x1509   :  { %v1023_v21 = vadd.f32 %v1021_v20, %v1013_v19 }
0x150b   :  { %1659 = vtanh.f32 %v1023_v21 }
0x1515   :  { %v1660_v24 = vpop.eup %1659 }
0x1516   :  { %1026 = vrot.lane.b32.xlu1 %v1660_v24, %s1670_s2 }
0x1588   :  { %v1027_v28 = vpop.permute.xlu1 %1026 }
0x1589   :  { %v1029_v29 = vmul.f32 %v1658_v11, %v1027_v28 }
0x158b   :  { %v1035_v30 = vsel %vm1034_vm3, %v1029_v29, %v928_v0 }
0x158c   :  { %1044 = vrot.lane.b32.xlu0 %v1035_v30, %s1671_s8 }
0x15fe   :  { %v1045_v31 = vpop.permute.xlu0 %1044 }
0x15ff   :  { %1528 = vmatmul.mubr.msk.f32.vlgmr.msra.gmra.mrb[12].mxu0 %vm182_vm4, %v1045_v31 }
0x1600   :  { %1541 = vmatprep.mubr.msk.f32.mxu0 %vm1666_vm1, %v1667_v4  ;;  %1583 = vmatpush3.bf16.msra.mxu0 %v1582_v37 }
0x16d2   :  { %v1114_v33 = vpop.f32.mrb[12].mxu0 }
0x16d3   :  { %v1115_v34 = vadd.f32 %v1400_v32, %v1114_v33  ;;  %v1529_v3 = vpop.f32.mrb[13].mxu0 }
0x16d5   :  { %1360 = vst.msk [vmem:[%s1953_s5] sm:$0xff] %vm182_vm4, %v1115_v34  ;;  %1535 = vmatmul.mubr.msk.f32.vlgmr.msra.gmra.mrb[12].mxu1 %vm182_vm4, %v1115_v34 }
0x16d6   :  { %1548 = vmatprep.mubr.msk.f32.mxu1 %vm1666_vm1, %v1667_v4  ;;  %v1280_v4 = vld [vmem:[%s1951_s3 + $0x30] sm:$0xff]  ;;  %vm1364_vm1 = vcmask 261248  }
0x16d7   :  { %v1585_v44 = vpack.c.bf16 %v1281_v43, %v1280_v4 }
0x16d9   :  { %1586 = vmatpush3.bf16.msra.mxu1 %v1585_v44 }
0x17a8   :  { %v1194_v39 = vpop.f32.mrb[12].mxu1 }
0x17a9   :  { %v1195_v40 = vadd.f32 %v1402_v38, %v1194_v39  ;;  %v1536_v41 = vpop.f32.mrb[13].mxu1 }
0x17ab   :  { %1661 = vtanh.f32 %v1195_v40 }
0x17b5   :  { %v1662_v42 = vpop.eup %1661 }
0x17b6   :  { %1542 = vmatmul.mubr.msk.f32.vlgmr.msra.gmra.mrb[14].mxu0 %vm182_vm4, %v1662_v42 }
0x1889   :  { %v1275_v46 = vpop.f32.mrb[14].mxu0 }
0x188a   :  { %v1276_v47 = vadd.f32 %v1404_v45, %v1275_v46  ;;  %v1543_v48 = vpop.f32.mrb[15].mxu0 }
0x188c   :  { %1663 = vtanh.f32 %v1276_v47 }
0x1896   :  { %v1664_v49 = vpop.eup %1663 }
0x1897   :  { %1361 = vrot.lane.b32.xlu1 %v1664_v49, %s1670_s2  ;;  %1549 = vmatmul.mubr.msk.f32.vlgmr.msra.gmra.mrb[14].mxu1 %vm182_vm4, %v1664_v49 }
0x1909   :  { %v1362_v50 = vpop.permute.xlu1 %1361 }
0x190a   :  { %1365 = vst.msk [vmem:[%s1953_s5] sm:$0xff] %vm1364_vm1, %v1362_v50 }
0x196a   :  { %v1356_v52 = vpop.f32.mrb[14].mxu1 }
0x196b   :  { %v1357_v54 = vadd.f32 %v1406_v51, %v1356_v52  ;;  %v1550_v55 = vpop.f32.mrb[15].mxu1 }
0x196d   :  { %1367 = vrot.lane.b32.xlu0 %v1357_v54, %s1672_s1 }
0x19df   :  { %v1368_v56 = vpop.permute.xlu0 %1367 }
0x19e0   :  { %1371 = vst.msk [vmem:[%s1953_s5] sm:$0xff] %vm1370_vm5, %v1368_v56 }

</bundles_post_ra>
